<compile_context>
chip_gen: v6e
topology: v6e:2x2x1
jax: 0.10.0
libtpu: 0.0.40
codegen_flags: <defaults>
</compile_context>

<pallas_src>
import jax
import jax.numpy as jnp
from jax import lax
from jax.experimental import pallas as pl
from jax.experimental.pallas import tpu as pltpu

EPS = 1e-5
_MAX_BLOCK_B = 2048  # rows per batch tile; ~3 MiB of live VMEM at this size,
                     # safely inside even v5e's 16 MiB default scoped VMEM.


def _round_up(x, m):
    return (x + m - 1) // m * m


# ---------------------------------------------------------------------------
# Kernel
# ---------------------------------------------------------------------------
def _make_kernel(lane_dense_out: bool):
    """Fused (fc + folded-BN + ReLU) x3 + fc kernel.

    All matmul operands are bf16; accumulation / bias / ReLU are f32.
    If `lane_dense_out` (output_size == 1), w4 arrives transposed as (1, h3)
    and the final layer is an NT matmul producing a lane-dense (1, block_b)
    row, stored into a (1, 1, block_b) output block.
    """

    def kernel(x_ref, w1_ref, b1_ref, w2_ref, b2_ref, w3_ref, b3_ref,
               w4_ref, b4_ref, o_ref):
        def fc_relu(h_bf16, w_ref, b_ref):
            y = jnp.dot(h_bf16, w_ref[...],
                        preferred_element_type=jnp.float32) + b_ref[...]
            return jnp.maximum(y, 0.0).astype(jnp.bfloat16)

        h = x_ref[...]                      # (block_b, in_dim) bf16
        h = fc_relu(h, w1_ref, b1_ref)      # fc1 + bn1(folded) + relu (+dropout=id)
        h = fc_relu(h, w2_ref, b2_ref)      # fc2 + bn2(folded) + relu (+dropout=id)
        h = fc_relu(h, w3_ref, b3_ref)      # fc3 + bn3(folded) + relu (+dropout=id)

        if lane_dense_out:
            # fc4 with output_size == 1: w4 (1, h3) . h^T -> (1, block_b)
            # (NT dot_general), so the HBM writeback is lane-dense instead of
            # a masked width-1 column store.
            row = lax.dot_general(w4_ref[...], h, (((1,), (1,)), ((), ())),
                                  preferred_element_type=jnp.float32)
            o_ref[0] = row + b4_ref[...]          # o_ref: (1, 1, block_b)
        else:
            o_ref[...] = (jnp.dot(h, w4_ref[...],
                                  preferred_element_type=jnp.float32)
                          + b4_ref[...])

    return kernel


# ---------------------------------------------------------------------------
# Wrapper
# ---------------------------------------------------------------------------
def fold_bn(params, eps=EPS):
    """Fold eval-mode BatchNorm1d into the preceding Linear's weight/bias."""
    (w1, b1, g1, be1, m1, v1,
     w2, b2, g2, be2, m2, v2,
     w3, b3, g3, be3, m3, v3,
     w4, b4) = params

    def fold(w, b, g, be, m, v):
        scale = g * lax.rsqrt(v + eps)           # (1, fout)
        return w * scale, (b - m) * scale + be   # (fin, fout), (1, fout)

    w1f, b1f = fold(w1, b1, g1, be1, m1, v1)
    w2f, b2f = fold(w2, b2, g2, be2, m2, v2)
    w3f, b3f = fold(w3, b3, g3, be3, m3, v3)
    return (w1f, b1f, w2f, b2f, w3f, b3f, w4, b4)


def _pick_block_b(batch):
    """Auto tile size: multiple of 8, <= _MAX_BLOCK_B, and >= 2 grid steps
    whenever the batch allows (keeps both v7x TensorCores busy)."""
    if batch <= 16:
        return _round_up(batch, 8)
    half = _round_up(pl.cdiv(batch, 2), 8)
    return min(_MAX_BLOCK_B, half)


def mlp_forward(x, params, *, block_b=None):
    """x: (B, input_size) f32. Returns (B, output_size) f32 (eval-mode MLP)."""
    w1, b1, w2, b2, w3, b3, w4, b4 = fold_bn(params)
    B, in_dim = x.shape
    out_dim = w4.shape[1]

    if block_b is None:
        block_b = _pick_block_b(B)
    block_b = max(8, _round_up(int(block_b), 8))   # sublane alignment

    b_pad = _round_up(B, block_b)
    grid = b_pad // block_b

    lane_dense_out = (out_dim == 1)
    kernel = _make_kernel(lane_dense_out)

    # bf16 MXU operands (halves x's DMA bytes and the MXU pass count);
    # biases stay f32 (accumulation / bias / ReLU are f32 in-kernel).
    x_bf = x.astype(jnp.bfloat16)
    if b_pad != B:
        x_bf = jnp.pad(x_bf, ((0, b_pad - B), (0, 0)))
    w1b, w2b, w3b, w4b = (w.astype(jnp.bfloat16) for w in (w1, w2, w3, w4))
    w4_arg = w4b.T if lane_dense_out else w4b       # (1, h3) for lane-dense path

    inputs = (x_bf, w1b, b1, w2b, b2, w3b, b3, w4_arg, b4)

    # x is tiled over the batch; all weights/biases use a constant index_map
    # (full-array blocks) so they stay resident in VMEM across grid steps.
    in_specs = [pl.BlockSpec((block_b, in_dim), lambda i: (i, 0))]
    in_specs += [pl.BlockSpec(a.shape, lambda i: (0, 0)) for a in inputs[1:]]

    if lane_dense_out:
        # (grid, 1, block_b) output slab: last two block dims equal the full
        # array dims, stores are lane-dense; reshaped to (B, 1) below.
        out_shape = jax.ShapeDtypeStruct((grid, 1, block_b), jnp.float32)
        out_specs = pl.BlockSpec((1, 1, block_b), lambda i: (i, 0, 0))
    else:
        out_shape = jax.ShapeDtypeStruct((b_pad, out_dim), jnp.float32)
        out_specs = pl.BlockSpec((block_b, out_dim), lambda i: (i, 0))

    out = pl.pallas_call(
        kernel,
        grid=(grid,),
        in_specs=in_specs,
        out_specs=out_specs,
        out_shape=out_shape,
        compiler_params=pltpu.CompilerParams(
            dimension_semantics=("parallel",)),
    )(*inputs)

    if lane_dense_out:
        out = out.reshape(b_pad, 1)
    return out[:B]


# ---------------------------------------------------------------------------
# Parameter init & pure-JAX reference
# ---------------------------------------------------------------------------
def init_params(key, input_size=10, h1=128, h2=64, h3=32, out=1):
    """Deterministic synthetic parameters (PyTorch-Linear-style uniform init)."""
    dims = [(input_size, h1), (h1, h2), (h2, h3), (h3, out)]
    params = []
    for i, (fin, fout) in enumerate(dims):
        key, kw, kb, kg, kbe, km, kv = jax.random.split(key, 7)
        bound = 1.0 / jnp.sqrt(float(fin))
        w = jax.random.uniform(kw, (fin, fout), jnp.float32, -bound, bound)
        b = jax.random.uniform(kb, (1, fout), jnp.float32, -bound, bound)
        params += [w, b]
        if i < 3:  # BN params for the first three layers
            gamma = 1.0 + 0.1 * jax.random.normal(kg, (1, fout), jnp.float32)
            beta = 0.1 * jax.random.normal(kbe, (1, fout), jnp.float32)
            r_mean = 0.1 * jax.random.normal(km, (1, fout), jnp.float32)
            r_var = 0.5 + jnp.abs(jax.random.normal(kv, (1, fout), jnp.float32))
            params += [gamma, beta, r_mean, r_var]
    return tuple(params)


def mlp_reference(x, params):
    """Pure-JAX f32 reference (unfolded BN, eval mode) for correctness checks."""
    (w1, b1, g1, be1, m1, v1,
     w2, b2, g2, be2, m2, v2,
     w3, b3, g3, be3, m3, v3,
     w4, b4) = params

    def blk(h, w, b, g, be, m, v):
        y = h @ w + b
        return jnp.maximum(g * (y - m) / jnp.sqrt(v + EPS) + be, 0.0)

    h = blk(x, w1, b1, g1, be1, m1, v1)
    h = blk(h, w2, b2, g2, be2, m2, v2)
    h = blk(h, w3, b3, g3, be3, m3, v3)
    return h @ w4 + b4


# ---------------------------------------------------------------------------
if __name__ == "__main__":
    key = jax.random.PRNGKey(0)
    key, kx, kx2 = jax.random.split(key, 3)
    input_size = 10
    params = init_params(key, input_size=input_size)

    # Small batch: single-tile path (grid = 1), lane-dense output row.
    B = 8
    x = jax.random.normal(kx, (B, input_size), jnp.float32)
    out = jax.block_until_ready(mlp_forward(x, params))
    ref = mlp_reference(x, params)
    assert out.shape == (B, 1), out.shape
    err = jnp.max(jnp.abs(out - ref))
    assert jnp.allclose(out, ref, atol=5e-2, rtol=5e-2), (
        f"small-batch max err {err}")

    # Non-divisible batch: auto block_b, zero-padded last tile, 2 grid steps.
    B2 = 300
    x2 = jax.random.normal(kx2, (B2, input_size), jnp.float32)
    out2 = jax.block_until_ready(mlp_forward(x2, params))
    ref2 = mlp_reference(x2, params)
    assert out2.shape == (B2, 1), out2.shape
    err2 = jnp.max(jnp.abs(out2 - ref2))
    assert jnp.allclose(out2, ref2, atol=5e-2, rtol=5e-2), (
        f"tiled max err {err2}")

    print("KERNEL_OK")
</pallas_src>

<mosaic_0001>
module attributes {stable_mosaic.version = 11 : i64} {
  func.func @kernel(%arg0: i32, %arg1: memref<8x10xbf16, #tpu.memory_space<vmem>>, %arg2: memref<10x128xbf16, #tpu.memory_space<vmem>>, %arg3: memref<1x128xf32, #tpu.memory_space<vmem>>, %arg4: memref<128x64xbf16, #tpu.memory_space<vmem>>, %arg5: memref<1x64xf32, #tpu.memory_space<vmem>>, %arg6: memref<64x32xbf16, #tpu.memory_space<vmem>>, %arg7: memref<1x32xf32, #tpu.memory_space<vmem>>, %arg8: memref<1x32xbf16, #tpu.memory_space<vmem>>, %arg9: memref<1x1xf32, #tpu.memory_space<vmem>>, %arg10: memref<1x1x8xf32, #tpu.memory_space<vmem>>) attributes {dimension_semantics = [#tpu.dimension_semantics<parallel>], iteration_bounds = array<i64: 1>, scalar_prefetch = 0 : i64, scratch_operands = 0 : i64, tpu.core_type = #tpu.core_type<tc>, window_params = [{transform_indices = @transform_0, window_bounds = array<i64: 8, 10>}, {pipeline_mode = #tpu.pipeline_mode<synchronous>, transform_indices = @transform_1, window_bounds = array<i64: 10, 128>}, {pipeline_mode = #tpu.pipeline_mode<synchronous>, transform_indices = @transform_2, window_bounds = array<i64: 1, 128>}, {pipeline_mode = #tpu.pipeline_mode<synchronous>, transform_indices = @transform_3, window_bounds = array<i64: 128, 64>}, {pipeline_mode = #tpu.pipeline_mode<synchronous>, transform_indices = @transform_4, window_bounds = array<i64: 1, 64>}, {pipeline_mode = #tpu.pipeline_mode<synchronous>, transform_indices = @transform_5, window_bounds = array<i64: 64, 32>}, {pipeline_mode = #tpu.pipeline_mode<synchronous>, transform_indices = @transform_6, window_bounds = array<i64: 1, 32>}, {pipeline_mode = #tpu.pipeline_mode<synchronous>, transform_indices = @transform_7, window_bounds = array<i64: 1, 32>}, {pipeline_mode = #tpu.pipeline_mode<synchronous>, transform_indices = @transform_8, window_bounds = array<i64: 1, 1>}, {transform_indices = @transform_9, window_bounds = array<i64: 1, 1, 8>}]} {
    %c0 = arith.constant 0 : index
    %c0_0 = arith.constant 0 : index
    %0 = vector.load %arg1[%c0, %c0_0] : memref<8x10xbf16, #tpu.memory_space<vmem>>, vector<8x10xbf16>
    %c0_1 = arith.constant 0 : index
    %c0_2 = arith.constant 0 : index
    %1 = vector.load %arg2[%c0_1, %c0_2] : memref<10x128xbf16, #tpu.memory_space<vmem>>, vector<10x128xbf16>
    %cst = arith.constant dense<0.000000e+00> : vector<8x128xf32>
    %2 = tpu.matmul %0, %1, %cst {dimension_numbers = #tpu.dot_dimension_numbers<[1], [0], [0], [1], [0, 0, 1, 1], [], []>} : vector<8x10xbf16>, vector<10x128xbf16>, vector<8x128xf32> -> vector<8x128xf32>
    %c0_3 = arith.constant 0 : index
    %c0_4 = arith.constant 0 : index
    %3 = vector.load %arg3[%c0_3, %c0_4] : memref<1x128xf32, #tpu.memory_space<vmem>>, vector<1x128xf32>
    %4 = vector.broadcast %3 : vector<1x128xf32> to vector<8x128xf32>
    %5 = arith.addf %2, %4 : vector<8x128xf32>
    %cst_5 = arith.constant 0.000000e+00 : f32
    %6 = vector.broadcast %cst_5 : f32 to vector<8x128xf32>
    %7 = arith.maximumf %5, %6 : vector<8x128xf32>
    %8 = arith.truncf %7 : vector<8x128xf32> to vector<8x128xbf16>
    %c0_6 = arith.constant 0 : index
    %c0_7 = arith.constant 0 : index
    %9 = vector.load %arg4[%c0_6, %c0_7] : memref<128x64xbf16, #tpu.memory_space<vmem>>, vector<128x64xbf16>
    %cst_8 = arith.constant dense<0.000000e+00> : vector<8x64xf32>
    %10 = tpu.matmul %8, %9, %cst_8 {dimension_numbers = #tpu.dot_dimension_numbers<[1], [0], [0], [1], [0, 0, 1, 1], [], []>} : vector<8x128xbf16>, vector<128x64xbf16>, vector<8x64xf32> -> vector<8x64xf32>
    %c0_9 = arith.constant 0 : index
    %c0_10 = arith.constant 0 : index
    %11 = vector.load %arg5[%c0_9, %c0_10] : memref<1x64xf32, #tpu.memory_space<vmem>>, vector<1x64xf32>
    %12 = vector.broadcast %11 : vector<1x64xf32> to vector<8x64xf32>
    %13 = arith.addf %10, %12 : vector<8x64xf32>
    %cst_11 = arith.constant 0.000000e+00 : f32
    %14 = vector.broadcast %cst_11 : f32 to vector<8x64xf32>
    %15 = arith.maximumf %13, %14 : vector<8x64xf32>
    %16 = arith.truncf %15 : vector<8x64xf32> to vector<8x64xbf16>
    %c0_12 = arith.constant 0 : index
    %c0_13 = arith.constant 0 : index
    %17 = vector.load %arg6[%c0_12, %c0_13] : memref<64x32xbf16, #tpu.memory_space<vmem>>, vector<64x32xbf16>
    %cst_14 = arith.constant dense<0.000000e+00> : vector<8x32xf32>
    %18 = tpu.matmul %16, %17, %cst_14 {dimension_numbers = #tpu.dot_dimension_numbers<[1], [0], [0], [1], [0, 0, 1, 1], [], []>} : vector<8x64xbf16>, vector<64x32xbf16>, vector<8x32xf32> -> vector<8x32xf32>
    %c0_15 = arith.constant 0 : index
    %c0_16 = arith.constant 0 : index
    %19 = vector.load %arg7[%c0_15, %c0_16] : memref<1x32xf32, #tpu.memory_space<vmem>>, vector<1x32xf32>
    %20 = vector.broadcast %19 : vector<1x32xf32> to vector<8x32xf32>
    %21 = arith.addf %18, %20 : vector<8x32xf32>
    %cst_17 = arith.constant 0.000000e+00 : f32
    %22 = vector.broadcast %cst_17 : f32 to vector<8x32xf32>
    %23 = arith.maximumf %21, %22 : vector<8x32xf32>
    %24 = arith.truncf %23 : vector<8x32xf32> to vector<8x32xbf16>
    %c0_18 = arith.constant 0 : index
    %c0_19 = arith.constant 0 : index
    %25 = vector.load %arg8[%c0_18, %c0_19] : memref<1x32xbf16, #tpu.memory_space<vmem>>, vector<1x32xbf16>
    %cst_20 = arith.constant dense<0.000000e+00> : vector<1x8xf32>
    %26 = tpu.matmul %25, %24, %cst_20 {dimension_numbers = #tpu.dot_dimension_numbers<[1], [1], [0], [0], [0, 0, 1, 0], [], []>} : vector<1x32xbf16>, vector<8x32xbf16>, vector<1x8xf32> -> vector<1x8xf32>
    %c0_21 = arith.constant 0 : index
    %c0_22 = arith.constant 0 : index
    %27 = vector.load %arg9[%c0_21, %c0_22] : memref<1x1xf32, #tpu.memory_space<vmem>>, vector<1x1xf32>
    %28 = vector.broadcast %27 : vector<1x1xf32> to vector<1x8xf32>
    %29 = arith.addf %26, %28 : vector<1x8xf32>
    %c0_23 = arith.constant 0 : index
    %c0_24 = arith.constant 0 : index
    %c0_25 = arith.constant 0 : index
    %30 = vector.load %arg10[%c0_23, %c0_24, %c0_25] : memref<1x1x8xf32, #tpu.memory_space<vmem>>, vector<1x1x8xf32>
    %31 = vector.shape_cast %30 : vector<1x1x8xf32> to vector<1x8xf32>
    %32 = vector.shape_cast %29 : vector<1x8xf32> to vector<1x1x8xf32>
    tpu.vector_store %arg10[%c0_23, %c0_24, %c0_25], %32 {strides = array<i32>} : memref<1x1x8xf32, #tpu.memory_space<vmem>>, vector<1x1x8xf32>,
    return
  }
  func.func @transform_0(%arg0: i32) -> (i32, i32) {
    %c0_i32 = arith.constant 0 : i32
    %c0_i32_0 = arith.constant 0 : i32
    return %arg0, %c0_i32 : i32, i32
  }
  func.func @transform_1(%arg0: i32) -> (i32, i32) {
    %c0_i32 = arith.constant 0 : i32
    %c0_i32_0 = arith.constant 0 : i32
    %c0_i32_1 = arith.constant 0 : i32
    return %c0_i32, %c0_i32_0 : i32, i32
  }
  func.func @transform_2(%arg0: i32) -> (i32, i32) {
    %c0_i32 = arith.constant 0 : i32
    %c0_i32_0 = arith.constant 0 : i32
    %c0_i32_1 = arith.constant 0 : i32
    return %c0_i32, %c0_i32_0 : i32, i32
  }
  func.func @transform_3(%arg0: i32) -> (i32, i32) {
    %c0_i32 = arith.constant 0 : i32
    %c0_i32_0 = arith.constant 0 : i32
    %c0_i32_1 = arith.constant 0 : i32
    return %c0_i32, %c0_i32_0 : i32, i32
  }
  func.func @transform_4(%arg0: i32) -> (i32, i32) {
    %c0_i32 = arith.constant 0 : i32
    %c0_i32_0 = arith.constant 0 : i32
    %c0_i32_1 = arith.constant 0 : i32
    return %c0_i32, %c0_i32_0 : i32, i32
  }
  func.func @transform_5(%arg0: i32) -> (i32, i32) {
    %c0_i32 = arith.constant 0 : i32
    %c0_i32_0 = arith.constant 0 : i32
    %c0_i32_1 = arith.constant 0 : i32
    return %c0_i32, %c0_i32_0 : i32, i32
  }
  func.func @transform_6(%arg0: i32) -> (i32, i32) {
    %c0_i32 = arith.constant 0 : i32
    %c0_i32_0 = arith.constant 0 : i32
    %c0_i32_1 = arith.constant 0 : i32
    return %c0_i32, %c0_i32_0 : i32, i32
  }
  func.func @transform_7(%arg0: i32) -> (i32, i32) {
    %c0_i32 = arith.constant 0 : i32
    %c0_i32_0 = arith.constant 0 : i32
    %c0_i32_1 = arith.constant 0 : i32
    return %c0_i32, %c0_i32_0 : i32, i32
  }
  func.func @transform_8(%arg0: i32) -> (i32, i32) {
    %c0_i32 = arith.constant 0 : i32
    %c0_i32_0 = arith.constant 0 : i32
    %c0_i32_1 = arith.constant 0 : i32
    return %c0_i32, %c0_i32_0 : i32, i32
  }
  func.func @transform_9(%arg0: i32) -> (i32, i32, i32) {
    %c0_i32 = arith.constant 0 : i32
    %c0_i32_0 = arith.constant 0 : i32
    %c0_i32_1 = arith.constant 0 : i32
    return %arg0, %c0_i32, %c0_i32_0 : i32, i32, i32
  }
}

</mosaic_0001>

<bundles_post_ra>
// kernel: tpu_custom_call.1
= control target key start
LH: loop header
LB: loop body
LE: loop exit
PB: predicated region body
PF: predicated region fallthrough
CT: control target
= control target key end

     0   :  { %s630_s0 = inlined_call_operand.vmem [shape: bf16[8,10], index: 0, kind: input, shape index: {}]   ;;  %s631_s1 = inlined_call_operand.vmem [shape: bf16[10,128], index: 1, kind: input, shape index: {}]   ;;  %s632_s2 = inlined_call_operand.vmem [shape: f32[1,128], index: 2, kind: input, shape index: {}]   ;;  %s633_s3 = inlined_call_operand.vmem [shape: bf16[128,64], index: 3, kind: input, shape index: {}]   ;;  %s634_s4 = inlined_call_operand.vmem [shape: f32[1,64], index: 4, kind: input, shape index: {}]   ;;  %s635_s5 = inlined_call_operand.vmem [shape: bf16[64,32], index: 5, kind: input, shape index: {}]   ;;  %s636_s6 = inlined_call_operand.vmem [shape: f32[1,32], index: 6, kind: input, shape index: {}]   ;;  %s637_s7 = inlined_call_operand.vmem [shape: bf16[1,32], index: 7, kind: input, shape index: {}]   ;;  %s638_s8 = inlined_call_operand.<no memory space> [shape: f32[1,1], index: 8, kind: input, shape index: {}]   ;;  %s639_s9 = inlined_call_operand.hbm [shape: f32[1,1,8], index: 9, kind: output, shape index: {}]  }
   0x1   :  { %v14_v0 = vstv %s638_s8 }
   0x2   :  { %15 = vst [vmem:[#allocation2] sm:$0x1] %v14_v0 }
   0x3   :  { %vm55_vm0 = vcmask 1044480   ;;  %v494_v1 = vmov 0.0   ;;  %v459_v2 = vld [vmem:[%s631_s1] sm:$0x1f]   ;;  %vm495_vm1 = vmmov 0   ;;  %v460_v4 = vld [vmem:[%s633_s3 + $0x38] sm:$0xff]  }
   0x4   :  { %410 = vmatprep.subr.bf16.mxu0 %v494_v1  ;;  %416 = vmatprep.subr.bf16.mxu1 %v494_v1  ;;  %v36_v3 = vld [vmem:[%s630_s0] sm:$0xf]  ;;  %v57_v5 = vsel %vm55_vm0, %v459_v2, 0  ;;  %vm51_vm2 = vcmask 80896   ;;  %v461_v6 = vld [vmem:[%s633_s3 + $0x30] sm:$0xff]   ;;  %v462_v7 = vld [vmem:[%s633_s3 + $0x28] sm:$0xff]  }
   0x5   :  { %412 = vmatprep.mubr.msk.bf16.mxu0 %vm495_vm1, %v494_v1  ;;  %432 = vmatprep.mubr.msk.bf16.mxu1 %vm495_vm1, %v494_v1  ;;  %v463_v8 = vld [vmem:[%s633_s3 + $0x20] sm:$0xff]  }
   0x6   :  { %411 = vmatpush3.bf16.msra.mxu0 %v57_v5  ;;  %417 = vmatpush3.bf16.msra.mxu1 %v460_v4 }
   0x7   :  { %418 = vmatprep.subr.bf16.mxu1 %v494_v1  ;;  %436 = vmatprep.subr.bf16.mxu0 %v494_v1 }
   0x9   :  { %413 = vmatmul.mubr.msk.bf16.vlgmr.msra.gmra.mxu0 %vm51_vm2, %v36_v3 }
   0xa   :  { %419 = vmatpush3.bf16.msra.mxu1 %v461_v6  ;;  %444 = vmatprep.mubr.msk.bf16.mxu0 %vm495_vm1, %v494_v1 }
   0xb   :  { %420 = vmatprep.subr.bf16.mxu1 %v494_v1 }
   0xe   :  { %421 = vmatpush3.bf16.msra.mxu1 %v462_v7 }
   0xf   :  { %16 = vsyncpa [#allocation4], 0  ;;  %422 = vmatprep.subr.bf16.mxu1 %v494_v1  ;;  %v464_v9 = vld [vmem:[%s633_s3 + $0x18] sm:$0xff]   ;;  %v465_v10 = vld [vmem:[%s633_s3 + $0x10] sm:$0xff]   ;;  %vm253_vm3 = vcmask 523264   ;;  %v496_v34 = vmov 0   ;;  %v306_v45 = vlaneseq }
  0x10   :  { %v466_v11 = vld [vmem:[%s633_s3 + $0x8] sm:$0xff]   ;;  %v467_v12 = vld [vmem:[%s633_s3] sm:$0xff]   ;;  %v468_v13 = vld [vmem:[%s635_s5 + $0x18] sm:$0xff]   ;;  %458 = vset.pattern.permute.xlu0 %v496_v34  ;;  %vm310_vm4 = vcmask 261120   ;;  %vm357_vm5 = vcmask 57344  }
  0x11   :  { %437 = vmatpush3.bf16.msra.mxu0 %v468_v13  ;;  %v469_v14 = vld [vmem:[%s635_s5 + $0x10] sm:$0xff]   ;;  %v373_v15 = vld [vmem:[%s632_s2] ss:$0 sm:$0xff]  ;;  %v470_v23 = vld [vmem:[%s635_s5 + $0x8] sm:$0xff]   ;;  %v307_v46 = vshrl.u32 %v306_v45, 7 }
  0x12   :  { %423 = vmatpush3.bf16.msra.mxu1 %v463_v8  ;;  %438 = vmatprep.subr.bf16.mxu0 %v494_v1  ;;  %v471_v24 = vld [vmem:[%s635_s5] sm:$0xff]  }
  0x13   :  { %424 = vmatprep.subr.bf16.mxu1 %v494_v1  ;;  %v376_v25 = vld [vmem:[%s634_s4] ss:$0 sm:$0xff]  ;;  %v308_v47 = vsub.s32 0, %v307_v46 }
  0x14   :  { %v300_v33 = vld [vmem:[#allocation2] sm:$0x1] }
  0x15   :  { %439 = vmatpush3.bf16.msra.mxu0 %v469_v14  ;;  %303 = vperm.xlu0 %458, %v300_v33   ;;  %v385_v35 = vld [vmem:[%s636_s6] ss:$0 sm:$0xff]  ;;  %s497_s6 = smov [#allocation3]  }
  0x16   :  { %425 = vmatpush3.bf16.msra.mxu1 %v464_v9  ;;  %440 = vmatprep.subr.bf16.mxu0 %v494_v1  ;;  %v299_v44 = vld [vmem:[%s637_s7] sm:$0x1]  ;;  %s365_s0 = sshll.u32 %s497_s6, 4  ;;  %s366_s0 = int_to_ptr.vmem [resolvable:$true] %s365_s0 }
  0x17   :  { %426 = vmatprep.subr.bf16.mxu1 %v494_v1  ;;  %s472_s17 = scalar_lea.vmem %s366_s0, 16  ;;  %s476_s18 = scalar_lea.vmem %s366_s0, 32 }
  0x18   :  { %p473_p0 = scmp.ne.s32.totalorder %s366_s0, %s472_s17  ;;  %p477_p1 = scmp.lt.s32.totalorder %s366_s0, %s366_s0 }
  0x19   :  { %441 = vmatpush3.bf16.msra.mxu0 %v470_v23  ;;  %p478_p2 = scmp.lt.s32.totalorder %s476_s18, %s472_s17 }
  0x1a   :  { %427 = vmatpush3.bf16.msra.mxu1 %v465_v10  ;;  %442 = vmatprep.subr.bf16.mxu0 %v494_v1 }
  0x1b   :  { %428 = vmatprep.subr.bf16.mxu1 %v494_v1  ;;  %p479_p3 = por %p478_p2, %p477_p1 }
  0x1d   :  { %443 = vmatpush3.bf16.msra.mxu0 %v471_v24  ;;  %p480_p4 = pnand %p479_p3, %p473_p0 }
  0x1e   :  { %429 = vmatpush3.bf16.msra.mxu1 %v466_v11  ;;  %448 = vmatprep.subr.bf16.mxu0 %v494_v1 }
  0x1f   :  { %430 = vmatprep.subr.bf16.mxu1 %v494_v1 }
  0x22   :  { %431 = vmatpush3.bf16.msra.mxu1 %v467_v12 }
  0x90   :  { %v304_v48 = vpop.permute.xlu0 %303 }
  0x91   :  { %v309_v49 = vrot.slane %v304_v48, %v308_v47 }
  0xc9   :  { %v93_v16 = vpop.f32.mrf.mxu0 }
  0xca   :  { %v94_v17 = vadd.f32 %v373_v15, %v93_v16 }
  0xcb   :  { %v414_v18 = vpop.f32.mrf.mxu0 }
  0xcc   :  { %v99_v19 = vmax.f32 %v94_v17, 0.0 }
  0xcd   :  { %v96_v20 = vpop.f32.mrf.mxu0 }
  0xce   :  { %v100_v21 = vpack.c.bf16 %v99_v19, %v99_v19 }
  0xcf   :  { %v415_v22 = vpop.f32.mrf.mxu0 }
  0xd0   :  { %433 = vmatmul.mubr.bf16.vlgmr.msra.gmra.mxu1 %v100_v21 }
 0x190   :  { %v206_v26 = vpop.f32.mrf.mxu1 }
 0x191   :  { %v207_v27 = vadd.f32 %v376_v25, %v206_v26 }
 0x192   :  { %v434_v28 = vpop.f32.mrf.mxu1 }
 0x193   :  { %v212_v29 = vmax.f32 %v207_v27, 0.0 }
 0x194   :  { %v209_v30 = vpop.f32.mrf.mxu1 }
 0x195   :  { %v213_v31 = vpack.c.bf16 %v212_v29, %v212_v29 }
 0x196   :  { %v435_v32 = vpop.f32.mrf.mxu1 }
 0x197   :  { %445 = vmatmul.mubr.msk.bf16.vlgmr.msra.gmra.mxu0 %vm253_vm3, %v213_v31 }
 0x198   :  { %450 = vmatprep.mubr.msk.bf16.mxu0 %vm495_vm1, %v494_v1 }
 0x257   :  { %v291_v36 = vpop.f32.mrf.mxu0 }
 0x258   :  { %v292_v37 = vadd.f32 %v385_v35, %v291_v36 }
 0x259   :  { %v446_v38 = vpop.f32.mrf.mxu0 }
 0x25a   :  { %v297_v39 = vmax.f32 %v292_v37, 0.0 }
 0x25b   :  { %v294_v40 = vpop.f32.mrf.mxu0 }
 0x25c   :  { %v298_v41 = vpack.c.bf16 %v297_v39, %v297_v39 }
 0x25d   :  { %v447_v42 = vpop.f32.mrf.mxu0 }
 0x25e   :  { %v315_v43 = vsel %vm310_vm4, %v298_v41, 0 }
 0x25f   :  { %449 = vmatpush3.bf16.xpose.msra.mxu0 %v315_v43 }
 0x266   :  { %451 = vmatmul.mubr.msk.bf16.vlgmr.msra.gmra.mxu0 %vm310_vm4, %v299_v44 }
 0x326   :  { %v351_v50 = vpop.f32.mrf.mxu0 }
 0x327   :  { %v352_v51 = vadd.f32 %v351_v50, %v309_v49 }
 0x328   :  { %v452_v52 = vpop.f32.mrf.mxu0 }
 0x329   :  { %358 = vst.msk [vmem:[#allocation3] sm:$0x1] %vm357_vm5, %v352_v51 }
 0x32a   :  { %v354_v53 = vpop.f32.mrf.mxu0 }
 0x32b   :  { %483 = shalt.err (!%p480_p4)
}
 0x32c   :  { %368 = dma.vmem_to_hbm [thread:$0]  %s366_s0, 16, %s639_s9, [#allocation4]   ;;  %v453_v54 = vpop.f32.mrf.mxu0 }
 0x32d   :  { %492 = dma.done.wait [#allocation4], 16  }
 0x32e   :  { %493 = vsyncadd [#allocation4], 4294967280 }
 0x32f   :  { %372 = vsyncpa [#allocation4], 1 }

</bundles_post_ra>
